<compile_context>
chip_gen: v7x
topology: tpu7x:2x2x1
jax: 0.10.0
libtpu: 0.0.40
codegen_flags: <defaults>
</compile_context>

<pallas_src>
import functools

import jax
import jax.numpy as jnp
from jax.experimental import pallas as pl
from jax.experimental.pallas import tpu as pltpu


INPUT_SIZE = 9
HIDDEN_SIZE = 128
OUTPUT_SIZE = 256
NEG_SLOPE = 0.1

# Pipeline footprint at 4096 rows:
#   in  : 2 x (4096 x 9,   bf16) ~ 0.14 MiB
#   out : 2 x (4096 x 256, f32 ) ~ 8 MiB   (4 MiB with bf16 output)
#   w/b : ~0.2 MiB
# plus in-kernel f32 intermediates (~8 MiB) -> comfortably inside the 32 MiB
# scoped VMEM requested below on v5e/v6e (128 MiB phys) and v7x (64 MiB phys).
MAX_ROW_TILE = 4096
VMEM_LIMIT_BYTES = 32 * 1024 * 1024


def _leaky_relu(x):
    # max(x, 0.1*x): 2 VALU ops vs. the cmp+mul+select (3 ops) where() form.
    return jnp.maximum(x, NEG_SLOPE * x)


def _use_bf16_activations():
    """bf16 element-wise math only where the VPU supports it (v6e / v7x)."""
    try:
        kind = jax.devices()[0].device_kind.lower()
    except Exception:
        return False
    return ("v6" in kind) or ("v7" in kind)


def _choose_row_tile(rows):
    """Largest row tile covering the input.

    No halving for "more grid steps": on single-TC v5e/v6e extra steps only add
    ~0.35 us fixed pipeline overhead each with zero benefit, and on v7x large
    inputs (rows >= 2*MAX_ROW_TILE) still yield >=2 parallel steps so both
    TensorCores get work.
    """
    if rows >= MAX_ROW_TILE:
        return MAX_ROW_TILE
    return max(8, -(-rows // 8) * 8)  # round up to a sublane multiple


def _mlp_kernel(x_ref, w1_ref, b1_ref, w2_ref, b2_ref, w3_ref, b3_ref, o_ref,
                *, bf16_acts):
    """Fused 3-layer MLP on one row tile.

    Matmul inputs are bf16 (MXU-native rate), accumulation + bias adds are f32.
    When `bf16_acts` (v6e/v7x): the inter-layer LeakyReLU runs on packed bf16
    vregs and directly feeds the next matmul; on v5e it stays f32 and only the
    matmul inputs are cast.
    """
    h = jnp.dot(x_ref[...], w1_ref[...],
                preferred_element_type=jnp.float32) + b1_ref[...]
    h = (_leaky_relu(h.astype(jnp.bfloat16)) if bf16_acts
         else _leaky_relu(h).astype(jnp.bfloat16))

    h = jnp.dot(h, w2_ref[...],
                preferred_element_type=jnp.float32) + b2_ref[...]
    h = (_leaky_relu(h.astype(jnp.bfloat16)) if bf16_acts
         else _leaky_relu(h).astype(jnp.bfloat16))

    h = jnp.dot(h, w3_ref[...],
                preferred_element_type=jnp.float32) + b3_ref[...]
    o_ref[...] = _leaky_relu(h).astype(o_ref.dtype)


@functools.partial(jax.jit, static_argnames=("out_dtype", "bf16_acts", "row_tile"))
def gps_feature_extractor(gps_features, params, out_dtype=jnp.float32,
                          bf16_acts=None, row_tile=None):
    """gps_features: [batch, seq, INPUT_SIZE] -> [batch, seq, OUTPUT_SIZE].

    out_dtype=jnp.bfloat16 is the recommended fast path when the consumer
    allows it (halves the dominant output-writeback HBM stream).
    """
    w1, b1, w2, b2, w3, b3 = params
    batch, seq, in_sz = gps_features.shape
    assert in_sz == INPUT_SIZE

    if bf16_acts is None:
        bf16_acts = _use_bf16_activations()

    rows = batch * seq
    # bf16 input: the kernel rounds x to bf16 for the MXU anyway; casting in the
    # wrapper halves the (tiny) input DMA and removes one per-step VPU cast.
    x = gps_features.reshape(rows, in_sz).astype(jnp.bfloat16)

    if row_tile is None:
        row_tile = _choose_row_tile(rows)
    grid = (pl.cdiv(rows, row_tile),)

    out_itemsize = jnp.dtype(out_dtype).itemsize
    flops = 2 * rows * (INPUT_SIZE * HIDDEN_SIZE
                        + HIDDEN_SIZE * HIDDEN_SIZE
                        + HIDDEN_SIZE * OUTPUT_SIZE)
    bytes_accessed = (rows * INPUT_SIZE * 2                 # bf16 input
                      + rows * OUTPUT_SIZE * out_itemsize   # output
                      + sum(int(p.size) * p.dtype.itemsize for p in params))

    out = pl.pallas_call(
        functools.partial(_mlp_kernel, bf16_acts=bf16_acts),
        out_shape=jax.ShapeDtypeStruct((rows, OUTPUT_SIZE), out_dtype),
        grid_spec=pltpu.PrefetchScalarGridSpec(
            num_scalar_prefetch=0,
            grid=grid,
            in_specs=[
                pl.BlockSpec((row_tile, INPUT_SIZE), lambda i: (i, 0)),      # x tile
                pl.BlockSpec((INPUT_SIZE, HIDDEN_SIZE), lambda i: (0, 0)),   # w1
                pl.BlockSpec((1, HIDDEN_SIZE), lambda i: (0, 0)),            # b1
                pl.BlockSpec((HIDDEN_SIZE, HIDDEN_SIZE), lambda i: (0, 0)),  # w2
                pl.BlockSpec((1, HIDDEN_SIZE), lambda i: (0, 0)),            # b2
                pl.BlockSpec((HIDDEN_SIZE, OUTPUT_SIZE), lambda i: (0, 0)),  # w3
                pl.BlockSpec((1, OUTPUT_SIZE), lambda i: (0, 0)),            # b3
            ],
            out_specs=pl.BlockSpec((row_tile, OUTPUT_SIZE), lambda i: (i, 0)),
        ),
        compiler_params=pltpu.CompilerParams(
            dimension_semantics=("parallel",),   # rows shard across v7x TCs
            vmem_limit_bytes=VMEM_LIMIT_BYTES,
        ),
        cost_estimate=pl.CostEstimate(
            flops=flops, transcendentals=0, bytes_accessed=bytes_accessed),
    )(x, w1, b1, w2, b2, w3, b3)

    return out.reshape(batch, seq, OUTPUT_SIZE)


def init_params(key):
    """Deterministic Kaiming-style init matching the PyTorch layer shapes.

    PyTorch Linear stores weight as (out, in); we keep (in, out) so the hot
    path is row-major matmuls.  Weights are stored bf16 (MXU-native matmul
    inputs); biases stay f32 ((1, out) so they broadcast over the row tile).
    """
    ks = jax.random.split(key, 6)

    def linear(kw, kb, fan_in, fan_out):
        w = jax.random.normal(kw, (fan_in, fan_out), jnp.float32) * (2.0 / fan_in) ** 0.5
        bound = (1.0 / fan_in) ** 0.5
        b = jax.random.uniform(kb, (1, fan_out), jnp.float32, -bound, bound)
        return w.astype(jnp.bfloat16), b

    w1, b1 = linear(ks[0], ks[1], INPUT_SIZE, HIDDEN_SIZE)
    w2, b2 = linear(ks[2], ks[3], HIDDEN_SIZE, HIDDEN_SIZE)
    w3, b3 = linear(ks[4], ks[5], HIDDEN_SIZE, OUTPUT_SIZE)
    return (w1, b1, w2, b2, w3, b3)


def _reference_f32(gps_features, params):
    """Pure f32 reference (PyTorch module semantics)."""
    w1, b1, w2, b2, w3, b3 = params
    b, s, _ = gps_features.shape
    x = gps_features.reshape(-1, INPUT_SIZE).astype(jnp.float32)
    h = _leaky_relu(jnp.dot(x, w1.astype(jnp.float32), precision="highest") + b1)
    h = _leaky_relu(jnp.dot(h, w2.astype(jnp.float32), precision="highest") + b2)
    h = _leaky_relu(jnp.dot(h, w3.astype(jnp.float32), precision="highest") + b3)
    return h.reshape(b, s, OUTPUT_SIZE)


def _reference_matched(gps_features, params, bf16_acts):
    """Numerics-matched reference: same dtypes/rounding as the kernel."""
    w1, b1, w2, b2, w3, b3 = params
    b, s, _ = gps_features.shape
    x = gps_features.reshape(-1, INPUT_SIZE).astype(jnp.bfloat16)

    h = jnp.dot(x, w1, preferred_element_type=jnp.float32) + b1
    h = (_leaky_relu(h.astype(jnp.bfloat16)) if bf16_acts
         else _leaky_relu(h).astype(jnp.bfloat16))
    h = jnp.dot(h, w2, preferred_element_type=jnp.float32) + b2
    h = (_leaky_relu(h.astype(jnp.bfloat16)) if bf16_acts
         else _leaky_relu(h).astype(jnp.bfloat16))
    h = jnp.dot(h, w3, preferred_element_type=jnp.float32) + b3
    h = _leaky_relu(h)
    return h.reshape(b, s, OUTPUT_SIZE)


if __name__ == "__main__":
    key = jax.random.PRNGKey(0)
    pkey, xkey, xkey2 = jax.random.split(key, 3)

    params = init_params(pkey)
    bf16_acts = _use_bf16_activations()

    # Small shape consistent with the module's forward: [batch, seq, 9].
    batch, seq = 2, 8
    gps = jax.random.normal(xkey, (batch, seq, INPUT_SIZE), jnp.float32)

    out = jax.block_until_ready(
        gps_feature_extractor(gps, params, bf16_acts=bf16_acts))
    assert out.shape == (batch, seq, OUTPUT_SIZE), out.shape
    assert out.dtype == jnp.float32, out.dtype
    # Tight check vs. a reference with identical numerics (bf16 matmul inputs).
    assert jnp.allclose(out, _reference_matched(gps, params, bf16_acts),
                        atol=2e-3, rtol=2e-3)
    # Loose check vs. pure-f32 module semantics (bf16 weights/inputs -> ~1%).
    assert jnp.allclose(out, _reference_f32(gps, params), atol=1e-1, rtol=1e-1)

    # Ragged row count + forced multi-step grid: exercises the partial last
    # block and the parallel (megacore) grid axis.
    batch2, seq2 = 3, 100  # rows = 300 -> 3 steps of 128 with a ragged tail
    gps2 = jax.random.normal(xkey2, (batch2, seq2, INPUT_SIZE), jnp.float32)
    out2 = jax.block_until_ready(
        gps_feature_extractor(gps2, params, bf16_acts=bf16_acts, row_tile=128))
    assert out2.shape == (batch2, seq2, OUTPUT_SIZE), out2.shape
    assert jnp.allclose(out2, _reference_matched(gps2, params, bf16_acts),
                        atol=2e-3, rtol=2e-3)
    assert jnp.allclose(out2, _reference_f32(gps2, params), atol=1e-1, rtol=1e-1)

    # Recommended fast path: bf16 output halves the dominant writeback stream.
    out_bf16 = jax.block_until_ready(
        gps_feature_extractor(gps2, params, out_dtype=jnp.bfloat16,
                              bf16_acts=bf16_acts))
    assert out_bf16.shape == (batch2, seq2, OUTPUT_SIZE), out_bf16.shape
    assert out_bf16.dtype == jnp.bfloat16, out_bf16.dtype
    assert jnp.allclose(out_bf16.astype(jnp.float32),
                        _reference_matched(gps2, params, bf16_acts),
                        atol=5e-2, rtol=5e-2)

    print("KERNEL_OK")
</pallas_src>

<mosaic_0001>
module attributes {stable_mosaic.version = 11 : i64} {
  func.func @_mlp_kernel(%arg0: i32, %arg1: memref<16x9xbf16, #tpu.memory_space<vmem>>, %arg2: memref<9x128xbf16, #tpu.memory_space<vmem>>, %arg3: memref<1x128xf32, #tpu.memory_space<vmem>>, %arg4: memref<128x128xbf16, #tpu.memory_space<vmem>>, %arg5: memref<1x128xf32, #tpu.memory_space<vmem>>, %arg6: memref<128x256xbf16, #tpu.memory_space<vmem>>, %arg7: memref<1x256xf32, #tpu.memory_space<vmem>>, %arg8: memref<16x256xf32, #tpu.memory_space<vmem>>) attributes {dimension_semantics = [#tpu.dimension_semantics<parallel>], iteration_bounds = array<i64: 1>, scalar_prefetch = 0 : i64, scratch_operands = 0 : i64, tpu.core_type = #tpu.core_type<tc>, window_params = [{transform_indices = @transform_0, window_bounds = array<i64: 16, 9>}, {pipeline_mode = #tpu.pipeline_mode<synchronous>, transform_indices = @transform_1, window_bounds = array<i64: 9, 128>}, {pipeline_mode = #tpu.pipeline_mode<synchronous>, transform_indices = @transform_2, window_bounds = array<i64: 1, 128>}, {pipeline_mode = #tpu.pipeline_mode<synchronous>, transform_indices = @transform_3, window_bounds = array<i64: 128, 128>}, {pipeline_mode = #tpu.pipeline_mode<synchronous>, transform_indices = @transform_4, window_bounds = array<i64: 1, 128>}, {pipeline_mode = #tpu.pipeline_mode<synchronous>, transform_indices = @transform_5, window_bounds = array<i64: 128, 256>}, {pipeline_mode = #tpu.pipeline_mode<synchronous>, transform_indices = @transform_6, window_bounds = array<i64: 1, 256>}, {transform_indices = @transform_7, window_bounds = array<i64: 16, 256>}]} {
    %c0 = arith.constant 0 : index
    %c0_0 = arith.constant 0 : index
    %0 = vector.load %arg1[%c0, %c0_0] : memref<16x9xbf16, #tpu.memory_space<vmem>>, vector<16x9xbf16>
    %c0_1 = arith.constant 0 : index
    %c0_2 = arith.constant 0 : index
    %1 = vector.load %arg2[%c0_1, %c0_2] : memref<9x128xbf16, #tpu.memory_space<vmem>>, vector<9x128xbf16>
    %cst = arith.constant dense<0.000000e+00> : vector<16x128xf32>
    %2 = tpu.matmul %0, %1, %cst {dimension_numbers = #tpu.dot_dimension_numbers<[1], [0], [0], [1], [0, 0, 1, 1], [], []>} : vector<16x9xbf16>, vector<9x128xbf16>, vector<16x128xf32> -> vector<16x128xf32>
    %c0_3 = arith.constant 0 : index
    %c0_4 = arith.constant 0 : index
    %3 = vector.load %arg3[%c0_3, %c0_4] : memref<1x128xf32, #tpu.memory_space<vmem>>, vector<1x128xf32>
    %4 = vector.broadcast %3 : vector<1x128xf32> to vector<16x128xf32>
    %5 = arith.addf %2, %4 : vector<16x128xf32>
    %cst_5 = arith.constant 1.000000e-01 : f32
    %6 = vector.broadcast %cst_5 : f32 to vector<16x128xf32>
    %7 = arith.mulf %6, %5 : vector<16x128xf32>
    %8 = arith.maximumf %5, %7 : vector<16x128xf32>
    %9 = arith.truncf %8 : vector<16x128xf32> to vector<16x128xbf16>
    %c0_6 = arith.constant 0 : index
    %c0_7 = arith.constant 0 : index
    %10 = vector.load %arg4[%c0_6, %c0_7] : memref<128x128xbf16, #tpu.memory_space<vmem>>, vector<128x128xbf16>
    %cst_8 = arith.constant dense<0.000000e+00> : vector<16x128xf32>
    %11 = tpu.matmul %9, %10, %cst_8 {dimension_numbers = #tpu.dot_dimension_numbers<[1], [0], [0], [1], [0, 0, 1, 1], [], []>} : vector<16x128xbf16>, vector<128x128xbf16>, vector<16x128xf32> -> vector<16x128xf32>
    %c0_9 = arith.constant 0 : index
    %c0_10 = arith.constant 0 : index
    %12 = vector.load %arg5[%c0_9, %c0_10] : memref<1x128xf32, #tpu.memory_space<vmem>>, vector<1x128xf32>
    %13 = vector.broadcast %12 : vector<1x128xf32> to vector<16x128xf32>
    %14 = arith.addf %11, %13 : vector<16x128xf32>
    %cst_11 = arith.constant 1.000000e-01 : f32
    %15 = vector.broadcast %cst_11 : f32 to vector<16x128xf32>
    %16 = arith.mulf %15, %14 : vector<16x128xf32>
    %17 = arith.maximumf %14, %16 : vector<16x128xf32>
    %18 = arith.truncf %17 : vector<16x128xf32> to vector<16x128xbf16>
    %c0_12 = arith.constant 0 : index
    %c0_13 = arith.constant 0 : index
    %19 = vector.load %arg6[%c0_12, %c0_13] : memref<128x256xbf16, #tpu.memory_space<vmem>>, vector<128x256xbf16>
    %cst_14 = arith.constant dense<0.000000e+00> : vector<16x256xf32>
    %20 = tpu.matmul %18, %19, %cst_14 {dimension_numbers = #tpu.dot_dimension_numbers<[1], [0], [0], [1], [0, 0, 1, 1], [], []>} : vector<16x128xbf16>, vector<128x256xbf16>, vector<16x256xf32> -> vector<16x256xf32>
    %c0_15 = arith.constant 0 : index
    %c0_16 = arith.constant 0 : index
    %21 = vector.load %arg7[%c0_15, %c0_16] : memref<1x256xf32, #tpu.memory_space<vmem>>, vector<1x256xf32>
    %22 = vector.broadcast %21 : vector<1x256xf32> to vector<16x256xf32>
    %23 = arith.addf %20, %22 : vector<16x256xf32>
    %cst_17 = arith.constant 1.000000e-01 : f32
    %24 = vector.broadcast %cst_17 : f32 to vector<16x256xf32>
    %25 = arith.mulf %24, %23 : vector<16x256xf32>
    %26 = arith.maximumf %23, %25 : vector<16x256xf32>
    %c0_18 = arith.constant 0 : index
    %c0_19 = arith.constant 0 : index
    %27 = vector.load %arg8[%c0_18, %c0_19] : memref<16x256xf32, #tpu.memory_space<vmem>>, vector<16x256xf32>
    tpu.vector_store %arg8[%c0_18, %c0_19], %26 {strides = array<i32>} : memref<16x256xf32, #tpu.memory_space<vmem>>, vector<16x256xf32>,
    return
  }
  func.func @transform_0(%arg0: i32) -> (i32, i32) {
    %c0_i32 = arith.constant 0 : i32
    %c0_i32_0 = arith.constant 0 : i32
    return %arg0, %c0_i32 : i32, i32
  }
  func.func @transform_1(%arg0: i32) -> (i32, i32) {
    %c0_i32 = arith.constant 0 : i32
    %c0_i32_0 = arith.constant 0 : i32
    %c0_i32_1 = arith.constant 0 : i32
    return %c0_i32, %c0_i32_0 : i32, i32
  }
  func.func @transform_2(%arg0: i32) -> (i32, i32) {
    %c0_i32 = arith.constant 0 : i32
    %c0_i32_0 = arith.constant 0 : i32
    %c0_i32_1 = arith.constant 0 : i32
    return %c0_i32, %c0_i32_0 : i32, i32
  }
  func.func @transform_3(%arg0: i32) -> (i32, i32) {
    %c0_i32 = arith.constant 0 : i32
    %c0_i32_0 = arith.constant 0 : i32
    %c0_i32_1 = arith.constant 0 : i32
    return %c0_i32, %c0_i32_0 : i32, i32
  }
  func.func @transform_4(%arg0: i32) -> (i32, i32) {
    %c0_i32 = arith.constant 0 : i32
    %c0_i32_0 = arith.constant 0 : i32
    %c0_i32_1 = arith.constant 0 : i32
    return %c0_i32, %c0_i32_0 : i32, i32
  }
  func.func @transform_5(%arg0: i32) -> (i32, i32) {
    %c0_i32 = arith.constant 0 : i32
    %c0_i32_0 = arith.constant 0 : i32
    %c0_i32_1 = arith.constant 0 : i32
    return %c0_i32, %c0_i32_0 : i32, i32
  }
  func.func @transform_6(%arg0: i32) -> (i32, i32) {
    %c0_i32 = arith.constant 0 : i32
    %c0_i32_0 = arith.constant 0 : i32
    %c0_i32_1 = arith.constant 0 : i32
    return %c0_i32, %c0_i32_0 : i32, i32
  }
  func.func @transform_7(%arg0: i32) -> (i32, i32) {
    %c0_i32 = arith.constant 0 : i32
    %c0_i32_0 = arith.constant 0 : i32
    return %arg0, %c0_i32 : i32, i32
  }
}

</mosaic_0001>

<bundles_post_ra>
// kernel: gps_feature_extractor.1
= control target key start
LH: loop header
LB: loop body
LE: loop exit
PB: predicated region body
PF: predicated region fallthrough
CT: control target
= control target key end

     0   :  { %12 = vsyncpa [#allocation3], 0  ;;  %s721_s0 = inlined_call_operand.vmem [shape: bf16[16,9], index: 0, kind: input, shape index: {}]   ;;  %s722_s1 = inlined_call_operand.vmem [shape: bf16[9,128], index: 1, kind: input, shape index: {}]   ;;  %s723_s2 = inlined_call_operand.vmem [shape: f32[1,128], index: 2, kind: input, shape index: {}]   ;;  %s724_s3 = inlined_call_operand.hbm [shape: bf16[128,128], index: 3, kind: input, shape index: {}]   ;;  %s725_s4 = inlined_call_operand.vmem [shape: f32[1,128], index: 4, kind: input, shape index: {}]   ;;  %s726_s5 = inlined_call_operand.hbm [shape: bf16[128,256], index: 5, kind: input, shape index: {}]   ;;  %s727_s6 = inlined_call_operand.vmem [shape: f32[1,256], index: 6, kind: input, shape index: {}]   ;;  %s728_s7 = inlined_call_operand.hbm [shape: f32[16,256], index: 7, kind: output, shape index: {}]  }
   0x1   :  { %13 = vsyncpa [#allocation6], 0 }
   0x2   :  { %14 = vsyncpa [#allocation4], 0  ;;  %s617_s24 = smov [#allocation2]   ;;  %s545_s28 = scalar_lea.hbm %s724_s3, 1024 }
   0x3   :  { %s26_s25 = sshll.u32 %s617_s24, 4  ;;  %p546_p0 = scmp.ne.s32.totalorder %s724_s3, %s545_s28  ;;  %s27_s25 = int_to_ptr.vmem [resolvable:$true] %s26_s25 }
   0x4   :  { %p549_p1 = scmp.lt.u32.totalorder %s545_s28, %s724_s3 }
   0x6   :  { %p551_p2 = pnand %p549_p1, %p546_p0 }
   0x8   :  { %554 = shalt.err (!%p551_p2)
}
   0x9   :  { %s555_s10 = scalar_lea.vmem %s27_s25, 1024  ;;  %p560_p4 = scmp.lt.s32.totalorder %s27_s25, %s27_s25 }
   0xa   :  { %p556_p3 = scmp.ne.s32.totalorder %s27_s25, %s555_s10  ;;  %p561_p5 = scmp.lt.s32.totalorder %s555_s10, %s555_s10 }
   0xc   :  { %p562_p6 = por %p561_p5, %p560_p4 }
   0xe   :  { %p563_p7 = pnand %p562_p6, %p556_p3 }
  0x10   :  { %566 = shalt.err (!%p563_p7)
}
  0x11   :  { %s618_s11 = smov 64   ;;  %s619_s12 = smov 4  }
  0x12   :  { %32 = dma.hbm_to_vmem [thread:$0]  %s724_s3, 1024, %s27_s25, [#allocation3], %s618_s11, %s618_s11, %s619_s12  }
  0x13   :  { %s620_s15 = smov [#allocation5]   ;;  %s567_s19 = scalar_lea.hbm %s726_s5, 2048 }
  0x14   :  { %s40_s16 = sshll.u32 %s620_s15, 4  ;;  %p568_p8 = scmp.ne.s32.totalorder %s726_s5, %s567_s19  ;;  %s41_s16 = int_to_ptr.vmem [resolvable:$true] %s40_s16 }
  0x15   :  { %p571_p9 = scmp.lt.u32.totalorder %s567_s19, %s726_s5 }
  0x17   :  { %p573_p10 = pnand %p571_p9, %p568_p8 }
  0x19   :  { %576 = shalt.err (!%p573_p10)
}
  0x1a   :  { %s577_s24 = scalar_lea.vmem %s41_s16, 2048  ;;  %p582_p12 = scmp.lt.s32.totalorder %s41_s16, %s41_s16 }
  0x1b   :  { %p578_p11 = scmp.ne.s32.totalorder %s41_s16, %s577_s24  ;;  %p583_p13 = scmp.lt.s32.totalorder %s577_s24, %s577_s24 }
  0x1d   :  { %p584_p0 = por %p583_p13, %p582_p12 }
  0x1f   :  { %p585_p1 = pnand %p584_p0, %p578_p11 }
  0x21   :  { %588 = shalt.err (!%p585_p1)
}
  0x22   :  { %s621_s3 = smov 128   ;;  %s622_s25 = smov 8  }
  0x23   :  { %46 = dma.hbm_to_vmem [thread:$0]  %s726_s5, 2048, %s41_s16, [#allocation6], %s621_s3, %s621_s3, %s622_s25  }
  0x24   :  { %611 = dma.done.wait [#allocation3], 1024  }
  0x25   :  { %612 = vsyncadd [#allocation3], 4294966272 }
  0x26   :  { %613 = dma.done.wait [#allocation6], 2048  }
  0x27   :  { %614 = vsyncadd [#allocation6], 4294965248  ;;  %vm81_vm0 = vcmask 1043456   ;;  %v623_v0 = vmov 0.0   ;;  %vm624_vm1 = vmmov 0   ;;  %vm82_vm2 = vcmask 1044480  }
  0x28   :  { %472 = vmatprep.subr.bf16.mxu0 %v623_v0  ;;  %478 = vmatprep.subr.bf16.mxu1 %v623_v0  ;;  %v625_v1 = vmov 65535   ;;  %v511_v4 = vld [vmem:[%s722_s1] sm:$0x1f]   ;;  %v513_v6 = vld [vmem:[#allocation2] sm:$0xff]   ;;  %vm77_vm3 = vcmask 72704   ;;  %v514_v8 = vld [vmem:[#allocation2 + $0x8] sm:$0xff]   ;;  %v269_v56 = vlaneseq }
  0x29   :  { %474 = vmatprep.mubr.msk.bf16.mxu0 %vm624_vm1, %v623_v0  ;;  %494 = vmatprep.mubr.msk.bf16.mxu1 %vm624_vm1, %v623_v0  ;;  %v83_v2 = vsel %vm81_vm0, 4294967295, %v625_v1  ;;  %v512_v7 = vld [vmem:[%s721_s0] sm:$0xff]   ;;  %v515_v9 = vld [vmem:[#allocation2 + $0x10] sm:$0xff]   ;;  %v517_v11 = vld [vmem:[#allocation2 + $0x20] sm:$0xff]   ;;  %v626_v43 = vmov 0  }
  0x2a   :  { %v84_v3 = vsel %vm82_vm2, %v83_v2, 0  ;;  %479 = vmatpush3.bf16.msra.mxu1 %v513_v6  ;;  %v516_v10 = vld [vmem:[#allocation2 + $0x18] sm:$0xff]   ;;  %v518_v12 = vld [vmem:[#allocation2 + $0x28] sm:$0xff]   ;;  %v519_v13 = vld [vmem:[#allocation2 + $0x30] sm:$0xff]   ;;  %v270_v57 = vshrl.u32 %v269_v56, 7 }
  0x2b   :  { %v86_v5 = vand.u32 %v511_v4, %v84_v3  ;;  %480 = vmatprep.subr.bf16.mxu1 %v623_v0  ;;  %v520_v14 = vld [vmem:[#allocation2 + $0x38] sm:$0xff]   ;;  %v521_v15 = vld [vmem:[#allocation5] ss:$8 sps:$4 sm:$0xff]   ;;  %v523_v16 = vld [vmem:[#allocation5 + $0x4] ss:$8 sps:$4 sm:$0xff]  }
  0x2c   :  { %v526_v17 = vld [vmem:[#allocation5 + $0x14] ss:$8 sps:$4 sm:$0xff]   ;;  %v524_v18 = vld [vmem:[#allocation5 + $0x10] ss:$8 sps:$4 sm:$0xff]   ;;  %v529_v19 = vld [vmem:[#allocation5 + $0x24] ss:$8 sps:$4 sm:$0xff]  }
  0x2d   :  { %473 = vmatpush3.bf16.msra.mxu0 %v86_v5  ;;  %v527_v20 = vld [vmem:[#allocation5 + $0x20] ss:$8 sps:$4 sm:$0xff]   ;;  %v532_v21 = vld [vmem:[#allocation5 + $0x34] ss:$8 sps:$4 sm:$0xff]   ;;  %v530_v22 = vld [vmem:[#allocation5 + $0x30] ss:$8 sps:$4 sm:$0xff]  }
  0x2e   :  { %481 = vmatpush3.bf16.msra.mxu1 %v514_v8  ;;  %359 = vmatprep.subr.bf16.mxu0 %v523_v16  ;;  %v535_v23 = vld [vmem:[#allocation5 + $0x44] ss:$8 sps:$4 sm:$0xff]   ;;  %v533_v24 = vld [vmem:[#allocation5 + $0x40] ss:$8 sps:$4 sm:$0xff]   ;;  %v538_v25 = vld [vmem:[#allocation5 + $0x54] ss:$8 sps:$4 sm:$0xff]  }
  0x2f   :  { %482 = vmatprep.subr.bf16.mxu1 %v623_v0  ;;  %v536_v26 = vld [vmem:[#allocation5 + $0x50] ss:$8 sps:$4 sm:$0xff]   ;;  %v541_v39 = vld [vmem:[#allocation5 + $0x64] ss:$8 sps:$4 sm:$0xff]   ;;  %v539_v40 = vld [vmem:[#allocation5 + $0x60] ss:$8 sps:$4 sm:$0xff]  }
  0x30   :  { %475 = vmatmul.mubr.msk.bf16.vlgmr.msra.gmra.mrb[0].mxu0 %vm77_vm3, %v512_v7  ;;  %v432_v27 = vld [vmem:[%s723_s2] ss:$0 sm:$0xff]  ;;  %v544_v41 = vld [vmem:[#allocation5 + $0x74] ss:$8 sps:$4 sm:$0xff]   ;;  %v271_v58 = vsub.s32 0, %v270_v57  ;;  %v275_v60 = vsub.s32 1, %v270_v57 }
  0x31   :  { %360 = vmatpush1.bf16.msra.mxu0 %v521_v15  ;;  %v542_v42 = vld [vmem:[#allocation5 + $0x70] ss:$8 sps:$4 sm:$0xff]   ;;  %391 = vmatprep.mubr.bf16.mxu0 %v626_v43 }
  0x32   :  { %483 = vmatpush3.bf16.msra.mxu1 %v515_v9  ;;  %361 = vmatprep.subr.bf16.mxu0 %v526_v17  ;;  %v436_v44 = vld [vmem:[%s725_s4] ss:$0 sm:$0xff]  ;;  %s627_s4 = smov [#allocation7]  }
  0x33   :  { %484 = vmatprep.subr.bf16.mxu1 %v623_v0  ;;  %v267_v59 = vld [vmem:[%s727_s6] sm:$0x3]  ;;  %s419_s11 = sshll.u32 %s627_s4, 4  ;;  %s420_s11 = int_to_ptr.vmem [resolvable:$true] %s419_s11 }
  0x34   :  { %v272_v61 = vrot.slane %v267_v59, %v271_v58  ;;  %v276_v62 = vrot.slane %v267_v59, %v275_v60  ;;  %s589_s6 = scalar_lea.vmem %s420_s11, 512  ;;  %p594_p3 = scmp.lt.s32.totalorder %s420_s11, %s420_s11 }
  0x35   :  { %362 = vmatpush1.bf16.msra.mxu0 %v524_v18  ;;  %p590_p2 = scmp.ne.s32.totalorder %s420_s11, %s589_s6  ;;  %p595_p4 = scmp.lt.s32.totalorder %s589_s6, %s589_s6 }
  0x36   :  { %485 = vmatpush3.bf16.msra.mxu1 %v516_v10  ;;  %363 = vmatprep.subr.bf16.mxu0 %v529_v19 }
  0x37   :  { %486 = vmatprep.subr.bf16.mxu1 %v623_v0  ;;  %p596_p5 = por %p595_p4, %p594_p3 }
  0x39   :  { %364 = vmatpush1.bf16.msra.mxu0 %v527_v20  ;;  %p597_p6 = pnand %p596_p5, %p590_p2 }
  0x3a   :  { %487 = vmatpush3.bf16.msra.mxu1 %v517_v11  ;;  %365 = vmatprep.subr.bf16.mxu0 %v532_v21 }
  0x3b   :  { %488 = vmatprep.subr.bf16.mxu1 %v623_v0 }
  0x3d   :  { %366 = vmatpush1.bf16.msra.mxu0 %v530_v22 }
  0x3e   :  { %489 = vmatpush3.bf16.msra.mxu1 %v518_v12  ;;  %367 = vmatprep.subr.bf16.mxu0 %v535_v23 }
  0x3f   :  { %490 = vmatprep.subr.bf16.mxu1 %v623_v0 }
  0x41   :  { %368 = vmatpush1.bf16.msra.mxu0 %v533_v24 }
  0x42   :  { %491 = vmatpush3.bf16.msra.mxu1 %v519_v13  ;;  %369 = vmatprep.subr.bf16.mxu0 %v538_v25 }
  0x43   :  { %492 = vmatprep.subr.bf16.mxu1 %v623_v0 }
  0x45   :  { %370 = vmatpush1.bf16.msra.mxu0 %v536_v26 }
  0x46   :  { %493 = vmatpush3.bf16.msra.mxu1 %v520_v14  ;;  %371 = vmatprep.subr.bf16.mxu0 %v541_v39 }
  0x49   :  { %372 = vmatpush1.bf16.msra.mxu0 %v539_v40 }
  0x4a   :  { %373 = vmatprep.subr.bf16.mxu0 %v544_v41 }
  0x4d   :  { %374 = vmatpush1.bf16.msra.mxu0 %v542_v42 }
 0x103   :  { %v122_v28 = vpop.f32.mrb[0].mxu0 }
 0x104   :  { %v123_v29 = vadd.f32 %v432_v27, %v122_v28  ;;  %v476_v30 = vpop.f32.mrb[1].mxu0 }
 0x105   :  { %v125_v31 = vpop.f32.mrb[2].mxu0 }
 0x106   :  { %v129_v32 = vmul.f32 0.1, %v123_v29  ;;  %v126_v33 = vadd.f32 %v432_v27, %v125_v31  ;;  %v477_v34 = vpop.f32.mrb[3].mxu0 }
 0x108   :  { %v130_v35 = vmul.f32 0.1, %v126_v33  ;;  %v131_v36 = vmax.f32 %v123_v29, %v129_v32 }
 0x10a   :  { %v132_v37 = vmax.f32 %v126_v33, %v130_v35 }
 0x10c   :  { %v133_v38 = vpack.c.bf16 %v132_v37, %v131_v36 }
 0x10e   :  { %495 = vmatmul.mubr.bf16.vlgmr.msra.gmra.mrb[0].mxu1 %v133_v38 }
 0x1e1   :  { %v239_v45 = vpop.f32.mrb[0].mxu1 }
 0x1e2   :  { %v240_v46 = vadd.f32 %v436_v44, %v239_v45  ;;  %v496_v47 = vpop.f32.mrb[1].mxu1 }
 0x1e3   :  { %v242_v48 = vpop.f32.mrb[2].mxu1 }
 0x1e4   :  { %v246_v49 = vmul.f32 0.1, %v240_v46  ;;  %v243_v50 = vadd.f32 %v436_v44, %v242_v48  ;;  %v497_v51 = vpop.f32.mrb[3].mxu1 }
 0x1e6   :  { %v247_v52 = vmul.f32 0.1, %v243_v50  ;;  %v248_v53 = vmax.f32 %v240_v46, %v246_v49 }
 0x1e8   :  { %v249_v54 = vmax.f32 %v243_v50, %v247_v52 }
 0x1ea   :  { %v250_v55 = vpack.c.bf16 %v249_v54, %v248_v53 }
 0x1ec   :  { %392 = vmatmul.mubr.bf16.vlgmr.msra.gmra.mrb[4].mxu0 %v250_v55 }
 0x2bf   :  { %v393_v63 = vpop.f32.mrb[4].mxu0 }
 0x2c0   :  { %v394_v0 = vadd.f32 %v393_v63, %v272_v61  ;;  %v395_v1 = vpop.f32.mrb[5].mxu0 }
 0x2c1   :  { %v396_v2 = vadd.f32 %v395_v1, %v276_v62  ;;  %v397_v3 = vpop.f32.mrb[6].mxu0 }
 0x2c2   :  { %v402_v4 = vmul.f32 0.1, %v394_v0  ;;  %v398_v5 = vadd.f32 %v397_v3, %v272_v61  ;;  %v399_v6 = vpop.f32.mrb[7].mxu0 }
 0x2c3   :  { %v403_v7 = vmul.f32 0.1, %v396_v2  ;;  %v400_v8 = vadd.f32 %v399_v6, %v276_v62 }
 0x2c4   :  { %v406_v9 = vmax.f32 %v394_v0, %v402_v4  ;;  %v404_v10 = vmul.f32 0.1, %v398_v5 }
 0x2c5   :  { %v407_v11 = vmax.f32 %v396_v2, %v403_v7  ;;  %v405_v12 = vmul.f32 0.1, %v400_v8 }
 0x2c6   :  { %410 = vst [vmem:[#allocation7] sm:$0xff] %v406_v9  ;;  %v408_v13 = vmax.f32 %v398_v5, %v404_v10 }
 0x2c7   :  { %411 = vst [vmem:[#allocation7 + $0x8] sm:$0xff] %v407_v11  ;;  %v409_v14 = vmax.f32 %v400_v8, %v405_v12 }
 0x2c8   :  { %412 = vst [vmem:[#allocation7 + $0x10] sm:$0xff] %v408_v13 }
 0x2c9   :  { %413 = vst [vmem:[#allocation7 + $0x18] sm:$0xff] %v409_v14 }
 0x2ca   :  { %600 = shalt.err (!%p597_p6)
}
 0x2cb   :  { %s601_s14 = scalar_lea.hbm %s728_s7, 512 }
 0x2cc   :  { %p602_p7 = scmp.ne.s32.totalorder %s728_s7, %s601_s14  ;;  %p605_p8 = scmp.lt.u32.totalorder %s601_s14, %s728_s7 }
 0x2ce   :  { %p607_p9 = pnand %p605_p8, %p602_p7 }
 0x2d0   :  { %610 = shalt.err (!%p607_p9)
}
 0x2d1   :  { %s628_s19 = smov 256   ;;  %s629_s20 = smov 16  }
 0x2d2   :  { %425 = dma.vmem_to_hbm [thread:$0]  %s420_s11, 512, %s728_s7, [#allocation4], %s628_s19, %s628_s19, %s629_s20  }
 0x2d3   :  { %615 = dma.done.wait [#allocation4], 512  }
 0x2d4   :  { %616 = vsyncadd [#allocation4], 4294966784 }
 0x2d5   :  { %429 = vsyncpa [#allocation3], 1 }
 0x2d6   :  { %430 = vsyncpa [#allocation6], 1 }
 0x2d7   :  { %431 = vsyncpa [#allocation4], 1 }

</bundles_post_ra>
